<compile_context>
chip_gen: v6e
topology: v6e:2x2x1
jax: 0.10.0
libtpu: 0.0.40
codegen_flags: <defaults>
</compile_context>

<pallas_src>
import functools

import jax
import jax.numpy as jnp
from jax.experimental import pallas as pl
from jax.experimental.pallas import tpu as pltpu


def _rmsnorm_kernel(x_ref, w_ref, o_ref, *, eps: float):
    # Hot path: square, mean-reduce over last axis (XLU), rsqrt (EUP),
    # scale (VPU) — all on the resident VMEM tile.
    x = x_ref[...]
    xf = x.astype(jnp.float32)                          # x.float()
    ms = jnp.mean(xf * xf, axis=-1, keepdims=True)      # x.pow(2).mean(-1, keepdim=True)
    normed = (xf * jax.lax.rsqrt(ms + eps)).astype(x.dtype)   # .type_as(x)
    # output * self.weight  (f32 weight -> torch promotes the product to f32).
    o_ref[...] = (normed.astype(jnp.float32) * w_ref[...]).astype(o_ref.dtype)


def _round_up(n: int, m: int) -> int:
    return ((n + m - 1) // m) * m


def _choose_row_tile(rows: int, dim: int, in_dtype, out_dtype,
                     *, max_tile: int = 1024,
                     vmem_budget_bytes: int = 32 * 1024 * 1024) -> int:
    """Largest row tile whose double-buffered in+out footprint fits the budget."""
    in_itemsize = jnp.dtype(in_dtype).itemsize
    out_itemsize = jnp.dtype(out_dtype).itemsize
    # Sublane packing factor: 8 rows/vreg for f32, 16 for bf16, 32 for int8.
    pack = max(8, 32 // max(in_itemsize, 1))
    # Double-buffered input tile + output tile per row.
    per_row_bytes = 2 * dim * (in_itemsize + out_itemsize)
    tile = max(pack, min(max_tile, vmem_budget_bytes // max(per_row_bytes, 1)))
    tile = (tile // pack) * pack
    # Never larger than the (pack-rounded) row count itself.
    tile = min(tile, _round_up(rows, pack))
    return max(tile, pack)


def rmsnorm(x: jax.Array, weight: jax.Array, eps: float = 1e-6,
            *, row_tile: int | None = None) -> jax.Array:
    """RMSNorm over the last axis of x, scaled by `weight` (shape (dim,))."""
    orig_shape = x.shape
    dim = orig_shape[-1]
    assert weight.shape == (dim,), f"weight shape {weight.shape} != ({dim},)"

    x2d = x.reshape(-1, dim)
    rows = x2d.shape[0]

    # Matches torch promotion: (x.dtype normed) * f32 weight.
    out_dtype = jnp.result_type(x.dtype, jnp.float32)

    if row_tile is None:
        row_tile = _choose_row_tile(rows, dim, x.dtype, out_dtype)

    # Pad the row count up to a tile multiple (zero rows normalize to finite
    # values and are sliced off afterwards), so the hardware-optimal tile can
    # be used regardless of batch*seq.
    rows_padded = _round_up(rows, row_tile)
    padded = rows_padded != rows
    if padded:
        x2d = jnp.pad(x2d, ((0, rows_padded - rows), (0, 0)))

    w2d = weight.reshape(1, dim).astype(jnp.float32)

    in_itemsize = jnp.dtype(x2d.dtype).itemsize
    out_itemsize = jnp.dtype(out_dtype).itemsize

    # Scoped VMEM: 2 x (input tile + output tile) double-buffers + weight row
    # + headroom, kept below v7x's 64 MiB physical VMEM.
    tile_bytes = row_tile * dim * (in_itemsize + out_itemsize)
    needed = 2 * tile_bytes + dim * 4
    vmem_limit = int(min(max(needed + needed // 4 + (2 << 20), 32 << 20), 56 << 20))

    # Advisory cost: the op is bytes-dominated (memory-bound).
    cost = pl.CostEstimate(
        flops=4 * rows_padded * dim,
        transcendentals=rows_padded,
        bytes_accessed=(rows_padded * dim * (in_itemsize + out_itemsize) + dim * 4),
    )

    out2d = pl.pallas_call(
        functools.partial(_rmsnorm_kernel, eps=eps),
        out_shape=jax.ShapeDtypeStruct((rows_padded, dim), out_dtype),
        grid_spec=pltpu.PrefetchScalarGridSpec(
            num_scalar_prefetch=0,
            grid=(rows_padded // row_tile,),
            in_specs=[
                pl.BlockSpec((row_tile, dim), lambda i: (i, 0)),
                pl.BlockSpec((1, dim), lambda i: (0, 0)),
            ],
            out_specs=pl.BlockSpec((row_tile, dim), lambda i: (i, 0)),
        ),
        compiler_params=pltpu.CompilerParams(
            dimension_semantics=("parallel",),
            vmem_limit_bytes=vmem_limit,
        ),
        cost_estimate=cost,
    )(x2d, w2d)

    if padded:
        out2d = out2d[:rows]
    return out2d.reshape(orig_shape[:-1] + (dim,))


def rmsnorm_ref(x, weight, eps=1e-6):
    xf = x.astype(jnp.float32)
    ms = jnp.mean(xf * xf, axis=-1, keepdims=True)
    normed = (xf * jax.lax.rsqrt(ms + eps)).astype(x.dtype)
    return normed.astype(jnp.float32) * weight.astype(jnp.float32)


if __name__ == "__main__":
    key = jax.random.PRNGKey(0)

    # Small but lane-dense shape (dim is a multiple of 128).
    batch, seq, dim = 2, 8, 128
    x = jax.random.normal(key, (batch, seq, dim), dtype=jnp.float32)

    # Deterministic parameter init (module __init__: weight = ones(dim)).
    weight = jnp.ones((dim,), dtype=jnp.float32)

    out = rmsnorm(x, weight, eps=1e-6)
    jax.block_until_ready(out)
    expected = rmsnorm_ref(x, weight, eps=1e-6)
    assert out.shape == x.shape
    assert jnp.allclose(out, expected, atol=1e-5, rtol=1e-5)

    # Second check: row count that does not divide the tile (exercises the
    # zero-pad + slice path) with non-trivial weights.
    x2 = jax.random.normal(jax.random.PRNGKey(1), (3, 5, dim), dtype=jnp.float32)
    w2 = 0.5 + jax.random.uniform(jax.random.PRNGKey(2), (dim,), dtype=jnp.float32)
    out2 = rmsnorm(x2, w2, eps=1e-6)
    jax.block_until_ready(out2)
    expected2 = rmsnorm_ref(x2, w2, eps=1e-6)
    assert out2.shape == x2.shape
    assert jnp.allclose(out2, expected2, atol=1e-5, rtol=1e-5)

    # Third check: bf16 input exercises the `.type_as(x)` downcast + f32
    # weight promotion path (output is f32, like torch).
    x3 = jax.random.normal(jax.random.PRNGKey(3), (4, 16, dim), dtype=jnp.bfloat16)
    out3 = rmsnorm(x3, w2, eps=1e-6)
    jax.block_until_ready(out3)
    expected3 = rmsnorm_ref(x3, w2, eps=1e-6)
    assert out3.dtype == expected3.dtype
    assert jnp.allclose(out3, expected3, atol=1e-2, rtol=1e-2)

    print("KERNEL_OK")
</pallas_src>

<mosaic_0001>
module attributes {stable_mosaic.version = 11 : i64} {
  func.func @_rmsnorm_kernel(%arg0: i32, %arg1: memref<16x128xf32, #tpu.memory_space<vmem>>, %arg2: memref<1x128xf32, #tpu.memory_space<vmem>>, %arg3: memref<16x128xf32, #tpu.memory_space<vmem>>) attributes {dimension_semantics = [#tpu.dimension_semantics<parallel>], iteration_bounds = array<i64: 1>, scalar_prefetch = 0 : i64, scratch_operands = 0 : i64, tpu.core_type = #tpu.core_type<tc>, window_params = [{transform_indices = @transform_0, window_bounds = array<i64: 16, 128>}, {pipeline_mode = #tpu.pipeline_mode<synchronous>, transform_indices = @transform_1, window_bounds = array<i64: 1, 128>}, {transform_indices = @transform_2, window_bounds = array<i64: 16, 128>}]} {
    %c0 = arith.constant 0 : index
    %c0_0 = arith.constant 0 : index
    %0 = vector.load %arg1[%c0, %c0_0] : memref<16x128xf32, #tpu.memory_space<vmem>>, vector<16x128xf32>
    %1 = arith.mulf %0, %0 : vector<16x128xf32>
    %cst = arith.constant dense<0.000000e+00> : vector<16xf32>
    %2 = vector.multi_reduction <add>, %1, %cst [1] : vector<16x128xf32> to vector<16xf32>
    %3 = vector.shape_cast %2 : vector<16xf32> to vector<16x1xf32>
    %cst_1 = arith.constant 1.280000e+02 : f32
    %4 = vector.broadcast %cst_1 : f32 to vector<16x1xf32>
    %5 = arith.divf %3, %4 : vector<16x1xf32>
    %cst_2 = arith.constant 9.99999997E-7 : f32
    %6 = vector.broadcast %cst_2 : f32 to vector<16x1xf32>
    %7 = arith.addf %5, %6 : vector<16x1xf32>
    %8 = math.rsqrt %7 : vector<16x1xf32>
    %9 = vector.broadcast %8 : vector<16x1xf32> to vector<16x128xf32>
    %10 = arith.mulf %0, %9 : vector<16x128xf32>
    %c0_3 = arith.constant 0 : index
    %c0_4 = arith.constant 0 : index
    %11 = vector.load %arg2[%c0_3, %c0_4] : memref<1x128xf32, #tpu.memory_space<vmem>>, vector<1x128xf32>
    %12 = vector.broadcast %11 : vector<1x128xf32> to vector<16x128xf32>
    %13 = arith.mulf %10, %12 : vector<16x128xf32>
    %c0_5 = arith.constant 0 : index
    %c0_6 = arith.constant 0 : index
    %14 = vector.load %arg3[%c0_5, %c0_6] : memref<16x128xf32, #tpu.memory_space<vmem>>, vector<16x128xf32>
    tpu.vector_store %arg3[%c0_5, %c0_6], %13 {strides = array<i32>} : memref<16x128xf32, #tpu.memory_space<vmem>>, vector<16x128xf32>,
    return
  }
  func.func @transform_0(%arg0: i32) -> (i32, i32) {
    %c0_i32 = arith.constant 0 : i32
    %c0_i32_0 = arith.constant 0 : i32
    return %arg0, %c0_i32 : i32, i32
  }
  func.func @transform_1(%arg0: i32) -> (i32, i32) {
    %c0_i32 = arith.constant 0 : i32
    %c0_i32_0 = arith.constant 0 : i32
    %c0_i32_1 = arith.constant 0 : i32
    return %c0_i32, %c0_i32_0 : i32, i32
  }
  func.func @transform_2(%arg0: i32) -> (i32, i32) {
    %c0_i32 = arith.constant 0 : i32
    %c0_i32_0 = arith.constant 0 : i32
    return %arg0, %c0_i32 : i32, i32
  }
}

</mosaic_0001>

<bundles_post_ra>
// kernel: tpu_custom_call.1
= control target key start
LH: loop header
LB: loop body
LE: loop exit
PB: predicated region body
PF: predicated region fallthrough
CT: control target
= control target key end

     0   :  { %7 = vsyncpa [#allocation3], 0  ;;  %s158_s0 = inlined_call_operand.hbm [shape: f32[16,128], index: 0, kind: input, shape index: {}]   ;;  %s159_s1 = inlined_call_operand.vmem [shape: f32[1,128], index: 1, kind: input, shape index: {}]   ;;  %s160_s2 = inlined_call_operand.hbm [shape: f32[16,128], index: 2, kind: output, shape index: {}]  }
   0x1   :  { %8 = vsyncpa [#allocation4], 0  ;;  %s124_s9 = smov [#allocation2]  }
   0x2   :  { %s14_s10 = sshll.u32 %s124_s9, 4  ;;  %s15_s10 = int_to_ptr.vmem [resolvable:$true] %s14_s10 }
   0x3   :  { %s88_s11 = scalar_lea.vmem %s15_s10, 256  ;;  %p93_p1 = scmp.lt.s32.totalorder %s15_s10, %s15_s10 }
   0x4   :  { %p89_p0 = scmp.ne.s32.totalorder %s15_s10, %s88_s11  ;;  %p94_p2 = scmp.lt.s32.totalorder %s88_s11, %s88_s11 }
   0x6   :  { %p95_p3 = por %p94_p2, %p93_p1 }
   0x8   :  { %p96_p4 = pnand %p95_p3, %p89_p0 }
   0xa   :  { %99 = shalt.err (!%p96_p4)
}
   0xb   :  { %s125_s12 = smov 128   ;;  %s126_s13 = smov 8  }
   0xc   :  { %20 = dma.hbm_to_vmem [thread:$0]  %s158_s0, 256, %s15_s10, [#allocation3], %s125_s12, %s125_s12, %s126_s13  }
   0xd   :  { %120 = dma.done.wait [#allocation3], 256  }
   0xe   :  { %121 = vsyncadd [#allocation3], 4294967040  ;;  %v26_v0 = vld [vmem:[#allocation2] sm:$0xff]  ;;  %v27_v1 = vld [vmem:[#allocation2 + $0x8] sm:$0xff]  ;;  %s127_s0 = smov [#allocation5]  }
   0xf   :  { %v28_v2 = vmul.f32 %v26_v0, %v26_v0  ;;  %v29_v3 = vmul.f32 %v27_v1, %v27_v1  ;;  %v71_v11 = vld [vmem:[%s159_s1] ss:$0 sm:$0xff]  ;;  %s59_s18 = sshll.u32 %s127_s0, 4  ;;  %s60_s18 = int_to_ptr.vmem [resolvable:$true] %s59_s18 }
  0x10   :  { %s100_s19 = scalar_lea.vmem %s60_s18, 256  ;;  %p105_p6 = scmp.lt.s32.totalorder %s60_s18, %s60_s18 }
  0x11   :  { %30 = vadd.xlane.f32.xlu0 %v28_v2  ;;  %p101_p5 = scmp.ne.s32.totalorder %s60_s18, %s100_s19  ;;  %p106_p7 = scmp.lt.s32.totalorder %s100_s19, %s100_s19 }
  0x13   :  { %p107_p8 = por %p106_p7, %p105_p6 }
  0x15   :  { %32 = vadd.xlane.f32.xlu0 %v29_v3  ;;  %p108_p9 = pnand %p107_p8, %p101_p5 }
  0x9a   :  { %v31_v4 = vpop.xlane.xlu0 %30 }
  0x9b   :  { %v35_v5 = vmul.f32 0.0078125, %v31_v4 }
  0x9d   :  { %v37_v6 = vadd.f32 1e-06, %v35_v5 }
  0x9e   :  { %v33_v7 = vpop.xlane.xlu0 %32 }
  0x9f   :  { %76 = vrsqrt.f32 %v37_v6  ;;  %v36_v8 = vmul.f32 0.0078125, %v33_v7 }
  0xa1   :  { %v38_v9 = vadd.f32 1e-06, %v36_v8 }
  0xa3   :  { %78 = vrsqrt.f32 %v38_v9 }
  0xac   :  { %v77_v10 = vpop.eup %76 }
  0xad   :  { %v41_v12 = vmul.f32 %v77_v10, %v26_v0 }
  0xaf   :  { %v50_v13 = vmul.f32 %v71_v11, %v41_v12 }
  0xb0   :  { %v79_v14 = vpop.eup %78 }
  0xb1   :  { %v42_v15 = vmul.f32 %v79_v14, %v27_v1  ;;  %52 = vst [vmem:[#allocation5] sm:$0xff] %v50_v13 }
  0xb3   :  { %v51_v16 = vmul.f32 %v71_v11, %v42_v15 }
  0xb5   :  { %53 = vst [vmem:[#allocation5 + $0x8] sm:$0xff] %v51_v16 }
  0xb6   :  { %111 = shalt.err (!%p108_p9)
}
  0xb7   :  { %65 = dma.vmem_to_hbm [thread:$0]  %s60_s18, 256, %s160_s2, [#allocation4], %s125_s12, %s125_s12, %s126_s13  }
  0xb8   :  { %122 = dma.done.wait [#allocation4], 256  }
  0xb9   :  { %123 = vsyncadd [#allocation4], 4294967040 }
  0xba   :  { %69 = vsyncpa [#allocation3], 1 }
  0xbb   :  { %70 = vsyncpa [#allocation4], 1 }

</bundles_post_ra>
